<compile_context>
chip_gen: v7x
topology: tpu7x:2x2x1
jax: 0.10.0
libtpu: 0.0.40
codegen_flags: <defaults>
</compile_context>

<pallas_src>
import functools

import jax
import jax.numpy as jnp
from jax.experimental import pallas as pl
from jax.experimental.pallas import tpu as pltpu


def _round_up(n: int, m: int) -> int:
    return ((n + m - 1) // m) * m


def _round_down(n: int, m: int) -> int:
    return (n // m) * m


def _sublane_multiple(dtype) -> int:
    # f32 -> 8, bf16/f16 -> 16, int8/fp8 -> 32 (sub-32-bit packs along sublanes).
    return max(8, 32 // jnp.dtype(dtype).itemsize)


# 32 MiB scoped limit: safe headroom on v7x (64 MiB physical VMEM per TC),
# and well above the default scoped limit on v5e (16 MiB) / v6e (32 MiB).
_VMEM_LIMIT_BYTES = 32 * 1024 * 1024
# Portion of that limit used for the double-buffered x/out tiles (+f32 temp);
# the rest is headroom for the resident weight row and compiler scratch.
_TILE_BUDGET_BYTES = 24 * 1024 * 1024


def _rmsnorm_kernel(x_ref, w_ref, o_ref, *, dim: int, eps: float):
    x = x_ref[...].astype(jnp.float32)                 # (tile_rows, D_pad)
    # Sum of squares along the feature (lane) axis -> XLU reduce.
    ss = jnp.sum(x * x, axis=-1, keepdims=True)        # (tile_rows, 1)
    # rms = L2 norm / sqrt(D), exactly as in the PyTorch module
    # (eps is added AFTER the sqrt -- do not fold into rsqrt).
    rms = jnp.sqrt(ss) * jnp.float32(dim ** -0.5)
    # Per-row reciprocal (exact); the big op becomes a VPU multiply.
    inv = pl.reciprocal(rms + jnp.float32(eps), approx=False)
    w = w_ref[...].astype(jnp.float32)                 # (1, D_pad) broadcasts
    o_ref[...] = (x * inv * w).astype(o_ref.dtype)


def rmsnorm(x: jax.Array, weight: jax.Array, eps: float = 1e-8) -> jax.Array:
    """RMSNorm over the last axis of x. x: (..., D), weight: (D,)."""
    orig_shape = x.shape
    D = orig_shape[-1]
    x2d = x.reshape(-1, D)
    N = x2d.shape[0]

    # Lane-dense feature dim: pad to a multiple of 128 so output stores are
    # unmasked. Zero-padding is semantically free here: the padded columns add
    # nothing to the sum of squares, and `dim` passed to the kernel stays D.
    D_pad = _round_up(D, 128)
    if D_pad != D:
        x2d = jnp.pad(x2d, ((0, 0), (0, D_pad - D)))
        w_pad = jnp.pad(weight, (0, D_pad - D))
    else:
        w_pad = weight
    w2d = w_pad.reshape(1, D_pad)

    sub = _sublane_multiple(x.dtype)
    in_bytes = jnp.dtype(x.dtype).itemsize
    out_bytes = in_bytes

    # Per-row VMEM footprint: double-buffered input + double-buffered output
    # blocks plus the in-kernel f32 temporary (x_ref[...].astype(f32)).
    bytes_per_row = D_pad * (2 * in_bytes + 2 * out_bytes + 4)
    budget_rows = max(sub, _round_down(_TILE_BUDGET_BYTES // bytes_per_row, sub))

    # Largest tile that fits both the budget and the problem (small inputs
    # collapse to a single / double block).
    tile_rows = min(budget_rows, _round_up(N, sub))

    # Megacore (v7x: 2 TCs/chip): make sure the 'parallel' grid axis has at
    # least 2 steps whenever there are >= 2 sublane-groups of rows, so both
    # TensorCores get work. Near-neutral on single-TC v5e/v6e.
    if N >= 2 * sub:
        tile_rows = min(tile_rows, _round_up(pl.cdiv(N, 2), sub))

    grid = (pl.cdiv(N, tile_rows),)   # ragged last block handled by Pallas

    kernel = functools.partial(_rmsnorm_kernel, dim=D, eps=eps)

    out = pl.pallas_call(
        kernel,
        out_shape=jax.ShapeDtypeStruct((N, D_pad), x.dtype),
        grid=grid,
        in_specs=[
            pl.BlockSpec((tile_rows, D_pad), lambda i: (i, 0)),
            pl.BlockSpec((1, D_pad), lambda i: (0, 0)),   # weight stays resident
        ],
        out_specs=pl.BlockSpec((tile_rows, D_pad), lambda i: (i, 0)),
        compiler_params=pltpu.CompilerParams(
            dimension_semantics=("parallel",),
            vmem_limit_bytes=_VMEM_LIMIT_BYTES,
        ),
    )(x2d, w2d)

    if D_pad != D:
        out = out[:, :D]
    return out.reshape(orig_shape)


def rmsnorm_ref(x, weight, eps=1e-8):
    rms = jnp.linalg.norm(x, axis=-1, keepdims=True) / jnp.sqrt(x.shape[-1])
    return weight * (x / (rms + eps))


if __name__ == "__main__":
    key = jax.random.PRNGKey(0)
    B, S, D = 4, 10, 512
    x = jax.random.normal(key, (B, S, D), dtype=jnp.float32)
    # Parameter init identical to nn.Parameter(torch.ones(dim))
    weight = jnp.ones((D,), dtype=jnp.float32)

    out = rmsnorm(x, weight, eps=1e-8)
    out = jax.block_until_ready(out)

    ref = rmsnorm_ref(x, weight, eps=1e-8)
    assert out.shape == (B, S, D)
    assert jnp.allclose(out, ref, atol=1e-5, rtol=1e-5), "mismatch vs reference"

    print("KERNEL_OK")
</pallas_src>

<mosaic_0001>
module attributes {stable_mosaic.version = 11 : i64} {
  func.func @_rmsnorm_kernel(%arg0: i32, %arg1: memref<24x512xf32, #tpu.memory_space<vmem>>, %arg2: memref<1x512xf32, #tpu.memory_space<vmem>>, %arg3: memref<24x512xf32, #tpu.memory_space<vmem>>) attributes {dimension_semantics = [#tpu.dimension_semantics<parallel>], iteration_bounds = array<i64: 2>, scalar_prefetch = 0 : i64, scratch_operands = 0 : i64, tpu.core_type = #tpu.core_type<tc>, window_params = [{transform_indices = @transform_0, window_bounds = array<i64: 24, 512>}, {pipeline_mode = #tpu.pipeline_mode<synchronous>, transform_indices = @transform_1, window_bounds = array<i64: 1, 512>}, {transform_indices = @transform_2, window_bounds = array<i64: 24, 512>}]} {
    %c0 = arith.constant 0 : index
    %c0_0 = arith.constant 0 : index
    %0 = vector.load %arg1[%c0, %c0_0] : memref<24x512xf32, #tpu.memory_space<vmem>>, vector<24x512xf32>
    %1 = arith.mulf %0, %0 : vector<24x512xf32>
    %cst = arith.constant dense<0.000000e+00> : vector<24xf32>
    %2 = vector.multi_reduction <add>, %1, %cst [1] : vector<24x512xf32> to vector<24xf32>
    %3 = vector.shape_cast %2 : vector<24xf32> to vector<24x1xf32>
    %4 = math.sqrt %3 : vector<24x1xf32>
    %cst_1 = arith.constant 0.0441941731 : f32
    %5 = vector.broadcast %cst_1 : f32 to vector<24x1xf32>
    %6 = arith.mulf %4, %5 : vector<24x1xf32>
    %cst_2 = arith.constant 9.99999993E-9 : f32
    %7 = vector.broadcast %cst_2 : f32 to vector<24x1xf32>
    %8 = arith.addf %6, %7 : vector<24x1xf32>
    %9 = tpu.reciprocal %8 : vector<24x1xf32> -> vector<24x1xf32>
    %c0_3 = arith.constant 0 : index
    %c0_4 = arith.constant 0 : index
    %10 = vector.load %arg2[%c0_3, %c0_4] : memref<1x512xf32, #tpu.memory_space<vmem>>, vector<1x512xf32>
    %11 = vector.broadcast %9 : vector<24x1xf32> to vector<24x512xf32>
    %12 = arith.mulf %0, %11 : vector<24x512xf32>
    %13 = vector.broadcast %10 : vector<1x512xf32> to vector<24x512xf32>
    %14 = arith.mulf %12, %13 : vector<24x512xf32>
    %c0_5 = arith.constant 0 : index
    %c0_6 = arith.constant 0 : index
    %15 = vector.load %arg3[%c0_5, %c0_6] : memref<24x512xf32, #tpu.memory_space<vmem>>, vector<24x512xf32>
    tpu.vector_store %arg3[%c0_5, %c0_6], %14 {strides = array<i32>} : memref<24x512xf32, #tpu.memory_space<vmem>>, vector<24x512xf32>,
    return
  }
  func.func @transform_0(%arg0: i32) -> (i32, i32) {
    %c0_i32 = arith.constant 0 : i32
    %c0_i32_0 = arith.constant 0 : i32
    return %arg0, %c0_i32 : i32, i32
  }
  func.func @transform_1(%arg0: i32) -> (i32, i32) {
    %c0_i32 = arith.constant 0 : i32
    %c0_i32_0 = arith.constant 0 : i32
    %c0_i32_1 = arith.constant 0 : i32
    return %c0_i32, %c0_i32_0 : i32, i32
  }
  func.func @transform_2(%arg0: i32) -> (i32, i32) {
    %c0_i32 = arith.constant 0 : i32
    %c0_i32_0 = arith.constant 0 : i32
    return %arg0, %c0_i32 : i32, i32
  }
}

</mosaic_0001>

<bundles_post_ra>
// kernel: tpu_custom_call.1
= control target key start
LH: loop header
LB: loop body
LE: loop exit
PB: predicated region body
PF: predicated region fallthrough
CT: control target
= control target key end

     0   :  { %7 = vsyncpa [#allocation3], 0  ;;  %s966_s0 = inlined_call_operand.hbm [shape: f32[40,512], index: 0, kind: input, shape index: {}]   ;;  %s967_s1 = inlined_call_operand.hbm [shape: f32[1,512], index: 1, kind: input, shape index: {}]   ;;  %s968_s2 = inlined_call_operand.hbm [shape: f32[40,512], index: 2, kind: output, shape index: {}]  }
   0x1   :  { %9 = vsyncpa [#allocation3 + $0x1], 0 }
   0x2   :  { %10 = vsyncpa [#allocation6], 0 }
   0x3   :  { %11 = vsyncpa [#allocation4], 0 }
   0x4   :  { %13 = vsyncpa [#allocation4 + $0x1], 0  ;;  %s675_s9 = smov 0   ;;  %s677_s10 = smov 0  }
   0x5   :  { %s679_s11 = smov 0   ;;  %s681_s12 = smov 0  }
   0x6 LB: > { %s696_s13 = sadd.s32 4294967295, %s651_s12   ;;  %s427_s14 = sadd.s32 4294967294, %s651_s12   ;;  %s651_s12 = sphi %s681_s12, %s988_s12   ;;  %s647_s11 = sphi %s679_s11, %s987_s11   ;;  %s643_s10 = sphi %s677_s10, %s986_s10   ;;  %s639_s9 = sphi %s675_s9, %s985_s9  }
   0x7   : > { %s700_s15 = sadd.s32 1, %s651_s12   ;;  %s26_s16 = sadd.s32 1, %s647_s11 }
   0x8   : > { %s23_s17 = ssub.s32 %s651_s12, %s700_s15  ;;  %p33_p0 = scmp.ne.s32.totalorder %s647_s11, %s643_s10 }
   0x9   : > { %p24_p1 = scmp.eq.s32.totalorder %s23_s17, 0  ;;  %p34_p2 = scmp.eq.s32.totalorder %s651_s12, 0 }
   0xa   : > { %p39_p3 = scmp.ne.s32.totalorder %s643_s10, %s639_s9  ;;  %p969_p4 = scmp.eq.s32.totalorder %s696_s13, 0 }
   0xb   : > { %s712_s18 = scalar_select %p24_p1, %s647_s11, %s26_s16  }
   0xc   : > { %p714_p5 = por %p34_p2, %p33_p0  ;;  %p720_p6 = por %p969_p4, %p39_p3 }
   0xd   : > { %p84_p7 = scmp.eq.s32.totalorder %s696_s13, 1  ;;  %p90_p8 = scmp.eq.s32.totalorder %s427_s14, 1 }
   0xe   : > { %s972_s19 = scalar_select %p714_p5, 1, 0 }
   0xf   : > { %s973_s20 = scalar_select %p720_p6, 1, 0 }
  0x10   : > { %p428_p9 = scmp.ge.s32.totalorder %s651_s12, 1  ;;  %p97_p10 = scmp.lt.s32.totalorder %s651_s12, 3 }
  0x11   : > { %p727_p11 = por %p84_p7, %p33_p0  ;;  %p731_p12 = por %p90_p8, %p39_p3 }
  0x12   : > { %p735_p13 = pnand %p428_p9, %p97_p10  ;;  %s653_s24 = smov [#allocation5]  }
  0x13   : > { %s974_s21 = scalar_select %p727_p11, 1, 0 }
  0x14   : > { %s975_s22 = scalar_select %p731_p12, 1, 0 }
  0x15   : > { %s976_s23 = scalar_select %p735_p13, 1, 0 }
  0x16   : > { %p465_p1 = pneg %p735_p13  ;;  %s110_s25 = sshll.u32 %s653_s24, 4  ;;  %s111_s25 = int_to_ptr.vmem [resolvable:$true] %s110_s25 }
  0x17   : > { %s525_s29 = scalar_lea.hbm %s967_s1, 64 }
  0x18   : > { %p743_p2 = pnand %p465_p1, %p969_p4  ;;  %p526_p0 = scmp.ne.s32.totalorder %s967_s1, %s525_s29 }
  0x19   : > { %p532_p9 = scmp.lt.u32.totalorder %s525_s29, %s967_s1 }
  0x1a   : > { %p527_p3 = pneg %p743_p2 }
  0x1c   : > { %p528_p7 = pnand %p527_p3, %p526_p0 }
  0x1e   : > { %p529_p8 = pneg %p528_p7 }
  0x20   : > { %p534_p10 = pnand %p532_p9, %p529_p8 }
  0x22   : > { %537 = shalt.err (!%p534_p10)
}
  0x23   : > { %s538_s6 = scalar_lea.vmem %s111_s25, 64  ;;  %p546_p11 = scmp.lt.s32.totalorder %s111_s25, %s111_s25 }
  0x24   : > { %p539_p1 = scmp.ne.s32.totalorder %s111_s25, %s538_s6  ;;  %p547_p6 = scmp.lt.s32.totalorder %s538_s6, %s538_s6 }
  0x26   : > { %p541_p4 = pnand %p539_p1, %p527_p3  ;;  %p548_p13 = por %p547_p6, %p546_p11 }
  0x28   : > { %p542_p12 = pneg %p541_p4 }
  0x2a   : > { %p549_p5 = pnand %p548_p13, %p542_p12 }
  0x2c   : > { %552 = shalt.err (!%p549_p5)
}
  0x2d   : > { %468 = dma.hbm_to_vmem [thread:$0]  (!%p743_p2), %s967_s1, 64, %s111_s25, [#allocation6]  }
  0x2e   : > { %p430_p0 = scmp.ge.s32.totalorder %s651_s12, 2 }
  0x2f   : > { %p978_p7 = scmp.ne.s32.totalorder (!%p430_p0), %s972_s19, 0 }
  0x30   : > { %117 = sbr.rel (%p430_p0) target bundleno = 90 (0x5a), region = 20 }
  0x37   : > { %120 = sbr.rel (!%p978_p7) target bundleno = 90 (0x5a), region = 24  ;;  %s121_s14 = sand.u32 (%p978_p7), 1, %s647_s11  }
  0x38   : > { %s126_s16 = smul.u32 (%p978_p7), 3, %s651_s12  ;;  %s773_s27 = scalar_lea.sflag (%p978_p7), [#allocation3], %s121_s14 }
  0x39   : > { %s457_s17 = smul.u32 (%p978_p7), 96, %s121_s14 }
  0x3a   : > { %s127_s24 = ssub.s32 (%p978_p7), 5, %s126_s16 }
  0x3b   : > { %p128_p4 = scmp.lt.s32.totalorder (%p978_p7), %s127_s24, 3  ;;  %s125_s28 = scalar_lea.vmem (%p978_p7), [#allocation2], %s457_s17 }
  0x3e   : > { %s990_s24 = smov (!%p128_p4, %s127_s24), 3 }
  0x3f   : > { %s770_s26 = sshll.u32 %s990_s24, 9 }
  0x40   : > { %s133_s25 = ssub.s32 1536, %s770_s26 }
  0x41   : > { %134 = vsyncadd %s773_s27, %s133_s25  ;;  %p433_p5 = scmp.ne.s32.totalorder %s770_s26, 0  ;;  %s455_s19 = smul.u32 1536, %s651_s12 }
  0x42   : > { %s140_s29 = sshll.u32 %s125_s28, 4  ;;  %s557_s8 = scalar_lea.hbm %s966_s0, 2560  ;;  %s783_s29 = int_to_ptr.vmem [resolvable:$true] %s140_s29 }
  0x43   : > { %s781_s4 = scalar_lea.hbm %s966_s0, %s455_s19 }
  0x44   : > { %s553_s5 = scalar_lea.hbm %s781_s4, %s770_s26  ;;  %p558_p13 = scmp.lt.u32.totalorder %s781_s4, %s966_s0 }
  0x45   : > { %p554_p6 = scmp.ne.s32.totalorder %s781_s4, %s553_s5  ;;  %p559_p2 = scmp.lt.u32.totalorder %s557_s8, %s553_s5 }
  0x46   : > { %p561_p8 = scmp.lt.u32.totalorder %s553_s5, %s781_s4 }
  0x47   : > { %p555_p11 = pnand %p554_p6, %p433_p5  ;;  %p560_p3 = por %p559_p2, %p558_p13 }
  0x49   : > { %p556_p12 = pneg %p555_p11  ;;  %p562_p9 = por %p561_p8, %p560_p3 }
  0x4b   : > { %p563_p10 = pnand %p562_p9, %p556_p12 }
  0x4d   : > { %566 = shalt.err (!%p563_p10)
}
  0x4e   : > { %s567_s17 = scalar_lea.vmem %s783_s29, %s770_s26  ;;  %s654_s24 = smov [#allocation2]  }
  0x4f   : > { %p568_p1 = scmp.ne.s32.totalorder %s783_s29, %s567_s17  ;;  %s571_s25 = sshll.u32 %s654_s24, 4  ;;  %s572_s25 = int_to_ptr.vmem [resolvable:$false] %s571_s25 }
  0x50   : > { %s573_s28 = scalar_lea.vmem %s572_s25, 3072  ;;  %p574_p6 = scmp.lt.s32.totalorder %s783_s29, %s572_s25 }
  0x51   : > { %p569_p7 = pnand %p568_p1, %p433_p5  ;;  %p575_p11 = scmp.lt.s32.totalorder %s573_s28, %s567_s17 }
  0x53   : > { %p570_p4 = pneg %p569_p7  ;;  %p576_p13 = por %p575_p11, %p574_p6 }
  0x55   : > { %p577_p2 = pnand %p576_p13, %p570_p4 }
  0x57   : > { %580 = shalt.err (!%p577_p2)
}
  0x58   : > { %s655_s19 = smov 512   ;;  %s656_s30 = smov 32  }
  0x59   : > { %146 = dma.hbm_to_vmem [thread:$0]  (%p433_p5), %s781_s4, %s770_s26, %s783_s29, %s773_s27, %s655_s19, %s655_s19, %s656_s30  }
  0x5a PF: > { %p979_p12 = scmp.ne.s32.totalorder %s976_s23, 0 }
  0x5b   : > { %s813_s3 = sand.u32 (!%p979_p12), 1, %s643_s10   ;;  %p980_p3 = scmp.ne.s32.totalorder (!%p979_p12), %s973_s20, 0 }
  0x5c   : > { %152 = sbr.rel (%p979_p12) target bundleno = 324 (0x144), region = 28  ;;  %s155_s6 = scalar_lea.sflag (!%p979_p12), [#allocation3], %s813_s3 }
  0x5d   : > { %s458_s5 = smul.u32 (!%p979_p12), 96, %s813_s3 }
  0x5f   : > { %s158_s7 = scalar_lea.vmem (!%p979_p12), [#allocation2], %s458_s5 }
  0x63   : > { %626 = dma.done.wait (%p980_p3), %s155_s6, 1536  }
  0x64   : > { %628 = vsyncadd (%p980_p3), %s155_s6, 4294965760  ;;  %p981_p5 = scmp.eq.s32.totalorder %s696_s13, 0 }
  0x66   : > { %630 = dma.done.wait (%p981_p5), [#allocation6], 64   ;;  %p982_p8 = pmov %p981_p5 }
  0x67   : > { %v827_v0 = vld [vmem:[%s158_s7 + $0x40] sm:$0xff]  ;;  %v829_v1 = vld [vmem:[%s158_s7 + $0x48] sm:$0xff]  ;;  %v831_v2 = vld [vmem:[%s158_s7 + $0x50] sm:$0xff]  ;;  %v278_v46 = vlaneseq  ;;  %s885_s20 = scalar_lea.vmem [#allocation7], %s458_s5  ;;  %s323_s23 = scalar_lea.sflag [#allocation4], %s813_s3 }
  0x68   : > { %632 = vsyncadd (%p982_p8), [#allocation6], 4294967232  ;;  %v833_v3 = vld [vmem:[%s158_s7 + $0x58] sm:$0xff]  ;;  %v215_v4 = vmul.f32 %v827_v0, %v827_v0  ;;  %v216_v5 = vmul.f32 %v829_v1, %v829_v1  ;;  %v217_v6 = vmul.f32 %v831_v2, %v831_v2  ;;  %v841_v7 = vld [vmem:[%s158_s7] sm:$0xff]  ;;  %p983_p9 = scmp.ne.s32.totalorder %s974_s21, 0 }
  0x69   : > { %v843_v8 = vld [vmem:[%s158_s7 + $0x8] sm:$0xff]  ;;  %v845_v9 = vld [vmem:[%s158_s7 + $0x10] sm:$0xff]  ;;  %v847_v10 = vld [vmem:[%s158_s7 + $0x18] sm:$0xff]  ;;  %v207_v11 = vmul.f32 %v841_v7, %v841_v7  ;;  %v218_v14 = vmul.f32 %v833_v3, %v833_v3  ;;  %v279_v55 = vshrl.u32 %v278_v46, 7  ;;  %s330_s26 = smul.u32 (%p983_p9), 3, %s696_s13 }
  0x6a   : > { %v208_v12 = vmul.f32 %v843_v8, %v843_v8  ;;  %v853_v13 = vld [vmem:[%s158_s7 + $0x20] sm:$0xff]  ;;  %v229_v15 = vadd.f32 %v216_v5, %v215_v4  ;;  %v209_v16 = vmul.f32 %v845_v9, %v845_v9  ;;  %v859_v17 = vld [vmem:[%s158_s7 + $0x28] sm:$0xff]  ;;  %v861_v18 = vld [vmem:[%s158_s7 + $0x30] sm:$0xff]  ;;  %v210_v21 = vmul.f32 %v847_v10, %v847_v10 }
  0x6b   : > { %v863_v19 = vld [vmem:[%s158_s7 + $0x38] sm:$0xff]  ;;  %v211_v20 = vmul.f32 %v853_v13, %v853_v13  ;;  %v212_v23 = vmul.f32 %v859_v17, %v859_v17  ;;  %v213_v24 = vmul.f32 %v861_v18, %v861_v18  ;;  %v280_v59 = vsub.s32 0, %v279_v55  ;;  %v264_v63 = vld [vmem:[#allocation5] sm:$0xf]  ;;  %s331_s27 = ssub.s32 (%p983_p9), 5, %s330_s26 }
  0x6c   : > { %v219_v22 = vadd.f32 %v208_v12, %v207_v11  ;;  %v230_v25 = vadd.f32 %v229_v15, %v217_v6  ;;  %v214_v27 = vmul.f32 %v863_v19, %v863_v19  ;;  %v284_v60 = vsub.s32 1, %v279_v55  ;;  %p332_p10 = scmp.lt.s32.totalorder (%p983_p9), %s331_s27, 3 }
  0x6d   : > { %v224_v28 = vadd.f32 %v212_v23, %v211_v20  ;;  %v288_v61 = vsub.s32 2, %v279_v55  ;;  %v292_v62 = vsub.s32 3, %v279_v55  ;;  %v281_v4 = vrot.slane %v264_v63, %v280_v59 }
  0x6e   : > { %v220_v26 = vadd.f32 %v219_v22, %v209_v16  ;;  %v231_v29 = vadd.f32 %v230_v25, %v218_v14  ;;  %v285_v5 = vrot.slane %v264_v63, %v284_v60 }
  0x6f   : > { %v225_v31 = vadd.f32 %v224_v28, %v213_v24  ;;  %v289_v6 = vrot.slane %v264_v63, %v288_v61  ;;  %v293_v11 = vrot.slane %v264_v63, %v292_v62 }
  0x70   : > { %v221_v30 = vadd.f32 %v220_v26, %v210_v21  ;;  %232 = vadd.xlane.f32.xlu1 %v231_v29 }
  0x71   : > { %v226_v32 = vadd.f32 %v225_v31, %v214_v27 }
  0x72   : > { %222 = vadd.xlane.f32.xlu0 %v221_v30 }
  0x76   : > { %227 = vadd.xlane.f32.xlu0 %v226_v32 }
  0xfd   : > { %v233_v33 = vpop.xlane.xlu1 %232 }
  0xfe   : > { %513 = vrsqrt.f32 %v233_v33  ;;  %vm250_vm0 = vcmp.eq.f32.partialorder %v233_v33, inf  ;;  %v253_v39 = vand.u32 2147483648, %v233_v33  ;;  %vm252_vm1 = vcmp.eq.f32.partialorder %v233_v33, 0.0 }
  0xff   : > { %v223_v34 = vpop.xlane.xlu0 %222 }
 0x100   : > { %515 = vrsqrt.f32 %v223_v34  ;;  %vm236_vm2 = vcmp.eq.f32.partialorder %v223_v34, inf  ;;  %v239_v42 = vand.u32 2147483648, %v223_v34  ;;  %vm238_vm3 = vcmp.eq.f32.partialorder %v223_v34, 0.0 }
 0x103   : > { %v228_v35 = vpop.xlane.xlu0 %227 }
 0x104   : > { %517 = vrsqrt.f32 %v228_v35  ;;  %vm243_vm4 = vcmp.eq.f32.partialorder %v228_v35, inf  ;;  %v246_v52 = vand.u32 2147483648, %v228_v35  ;;  %vm245_vm5 = vcmp.eq.f32.partialorder %v228_v35, 0.0 }
 0x108   : > { %v514_v36 = vpop.eup %513 }
 0x109   : > { %v249_v38 = vmul.f32 %v514_v36, %v233_v33 }
 0x10a   : > { %v516_v37 = vpop.eup %515 }
 0x10b   : > { %v235_v40 = vmul.f32 %v516_v37, %v223_v34  ;;  %v251_v41 = vsel %vm250_vm0, %v233_v33, %v249_v38 }
 0x10c   : > { %v254_v43 = vsel %vm252_vm1, %v253_v39, %v251_v41 }
 0x10d   : > { %v237_v44 = vsel %vm236_vm2, %v223_v34, %v235_v40  ;;  %v257_v47 = vmul.f32 0.044194173, %v254_v43 }
 0x10e   : > { %v518_v45 = vpop.eup %517  ;;  %v240_v48 = vsel %vm238_vm3, %v239_v42, %v237_v44 }
 0x10f   : > { %v255_v49 = vmul.f32 0.044194173, %v240_v48  ;;  %v242_v50 = vmul.f32 %v518_v45, %v228_v35  ;;  %v260_v51 = vadd.f32 1e-08, %v257_v47 }
 0x111   : > { %v258_v53 = vadd.f32 1e-08, %v255_v49  ;;  %v244_v54 = vsel %vm243_vm4, %v228_v35, %v242_v50  ;;  %519 = vrcp.f32 %v260_v51 }
 0x112   : > { %v247_v56 = vsel %vm245_vm5, %v246_v52, %v244_v54 }
 0x113   : > { %521 = vrcp.f32 %v258_v53  ;;  %v256_v57 = vmul.f32 0.044194173, %v247_v56 }
 0x115   : > { %v259_v58 = vadd.f32 1e-08, %v256_v57 }
 0x117   : > { %523 = vrcp.f32 %v259_v58 }
 0x11b   : > { %v520_v12 = vpop.eup %519 }
 0x11c   : > { %v273_v15 = vmul.f32 %v520_v12, %v827_v0  ;;  %v274_v16 = vmul.f32 %v520_v12, %v829_v1  ;;  %v275_v20 = vmul.f32 %v520_v12, %v831_v2  ;;  %v276_v21 = vmul.f32 %v520_v12, %v833_v3 }
 0x11d   : > { %v522_v14 = vpop.eup %521 }
 0x11e   : > { %v265_v22 = vmul.f32 %v522_v14, %v841_v7  ;;  %v266_v23 = vmul.f32 %v522_v14, %v843_v8  ;;  %v267_v24 = vmul.f32 %v522_v14, %v845_v9  ;;  %v268_v25 = vmul.f32 %v522_v14, %v847_v10 }
 0x11f   : > { %v306_v26 = vmul.f32 %v281_v4, %v273_v15  ;;  %v307_v27 = vmul.f32 %v285_v5, %v274_v16  ;;  %v308_v28 = vmul.f32 %v289_v6, %v275_v20  ;;  %v309_v29 = vmul.f32 %v293_v11, %v276_v21 }
 0x120   : > { %v298_v0 = vmul.f32 %v281_v4, %v265_v22  ;;  %v299_v30 = vmul.f32 %v285_v5, %v266_v23  ;;  %v300_v1 = vmul.f32 %v289_v6, %v267_v24  ;;  %v301_v31 = vmul.f32 %v293_v11, %v268_v25 }
 0x121   : > { %v524_v32 = vpop.eup %523  ;;  %318 = vst [vmem:[%s885_s20 + $0x40] sm:$0xff] %v306_v26  ;;  %319 = vst [vmem:[%s885_s20 + $0x48] sm:$0xff] %v307_v27  ;;  %329 = sbr.rel (!%p983_p9) target bundleno = 324 (0x144), region = 40 }
 0x122   : > { %320 = vst [vmem:[%s885_s20 + $0x50] sm:$0xff] %v308_v28  ;;  %321 = vst [vmem:[%s885_s20 + $0x58] sm:$0xff] %v309_v29  ;;  %v269_v2 = vmul.f32 %v524_v32, %v853_v13  ;;  %v270_v3 = vmul.f32 %v524_v32, %v859_v17  ;;  %v271_v7 = vmul.f32 %v524_v32, %v861_v18 }
 0x123   : > { %310 = vst [vmem:[%s885_s20] sm:$0xff] %v298_v0  ;;  %311 = vst [vmem:[%s885_s20 + $0x8] sm:$0xff] %v299_v30  ;;  %v272_v8 = vmul.f32 %v524_v32, %v863_v19 }
 0x124   : > { %312 = vst [vmem:[%s885_s20 + $0x10] sm:$0xff] %v300_v1  ;;  %313 = vst [vmem:[%s885_s20 + $0x18] sm:$0xff] %v301_v31  ;;  %v302_v9 = vmul.f32 %v281_v4, %v269_v2  ;;  %v303_v10 = vmul.f32 %v285_v5, %v270_v3  ;;  %v304_v33 = vmul.f32 %v289_v6, %v271_v7 }
 0x125   : > { %v305_v34 = vmul.f32 %v293_v11, %v272_v8 }
 0x126   : > { %314 = vst [vmem:[%s885_s20 + $0x20] sm:$0xff] %v302_v9  ;;  %315 = vst [vmem:[%s885_s20 + $0x28] sm:$0xff] %v303_v10 }
 0x127   : > { %316 = vst [vmem:[%s885_s20 + $0x30] sm:$0xff] %v304_v33  ;;  %317 = vst [vmem:[%s885_s20 + $0x38] sm:$0xff] %v305_v34 }
 0x128   : > { %s992_s27 = smov (!%p332_p10, %s331_s27), 3 }
 0x129   : > { %s907_s29 = sshll.u32 %s992_s27, 9 }
 0x12a   : > { %s337_s4 = ssub.s32 1536, %s907_s29 }
 0x12b   : > { %338 = vsyncadd %s323_s23, %s337_s4  ;;  %p442_p1 = scmp.ne.s32.totalorder %s907_s29, 0  ;;  %s456_s21 = smul.u32 1536, %s696_s13 }
 0x12c   : > { %s344_s8 = sshll.u32 %s885_s20, 4  ;;  %s657_s25 = smov [#allocation7]   ;;  %s920_s8 = int_to_ptr.vmem [resolvable:$true] %s344_s8 }
 0x12d   : > { %s918_s17 = scalar_lea.hbm %s968_s2, %s456_s21  ;;  %s581_s24 = scalar_lea.vmem %s920_s8, %s907_s29 }
 0x12e   : > { %p582_p7 = scmp.ne.s32.totalorder %s920_s8, %s581_s24  ;;  %s585_s28 = sshll.u32 %s657_s25, 4  ;;  %s586_s28 = int_to_ptr.vmem [resolvable:$false] %s585_s28 }
 0x12f   : > { %s587_s13 = scalar_lea.vmem %s586_s28, 3072  ;;  %p588_p11 = scmp.lt.s32.totalorder %s920_s8, %s586_s28 }
 0x130   : > { %p583_p4 = pnand %p582_p7, %p442_p1  ;;  %p589_p13 = scmp.lt.s32.totalorder %s587_s13, %s581_s24 }
 0x132   : > { %p584_p6 = pneg %p583_p4  ;;  %p590_p2 = por %p589_p13, %p588_p11 }
 0x134   : > { %p591_p12 = pnand %p590_p2, %p584_p6 }
 0x136   : > { %594 = shalt.err (!%p591_p12)
}
 0x137   : > { %s595_s19 = scalar_lea.hbm %s918_s17, %s907_s29  ;;  %s599_s6 = scalar_lea.hbm %s968_s2, 2560 }
 0x138   : > { %p596_p3 = scmp.ne.s32.totalorder %s918_s17, %s595_s19  ;;  %p600_p9 = scmp.lt.u32.totalorder %s918_s17, %s968_s2 }
 0x139   : > { %p601_p10 = scmp.lt.u32.totalorder %s599_s6, %s595_s19  ;;  %p603_p4 = scmp.lt.u32.totalorder %s595_s19, %s918_s17 }
 0x13a   : > { %p597_p5 = pnand %p596_p3, %p442_p1 }
 0x13b   : > { %p602_p7 = por %p601_p10, %p600_p9 }
 0x13c   : > { %p598_p8 = pneg %p597_p5 }
 0x13d   : > { %p604_p6 = por %p603_p4, %p602_p7 }
 0x13f   : > { %p605_p11 = pnand %p604_p6, %p598_p8 }
 0x141   : > { %608 = shalt.err (!%p605_p11)
}
 0x142   : > { %s658_s26 = smov 512   ;;  %s659_s27 = smov 32  }
 0x143   : > { %350 = dma.vmem_to_hbm [thread:$0]  (%p442_p1), %s920_s8, %s907_s29, %s918_s17, %s323_s23, %s658_s26, %s658_s26, %s659_s27  }
 0x144 PF: > { %s359_s4 = sand.u32 1, %s639_s9   ;;  %p984_p13 = scmp.ne.s32.totalorder %s975_s22, 0 }
 0x145   : > { %s360_s21 = scalar_lea.sflag [#allocation4], %s359_s4 }
 0x146   : > { %p470_p2 = pnand %p430_p0, %p984_p13 }
 0x148   : > { %634 = dma.done.wait (!%p470_p2), %s360_s21, 1536  }
 0x149   : > { %636 = vsyncadd (!%p470_p2), %s360_s21, 4294965760  ;;  %p16_p12 = scmp.ge.s32.totalorder %s700_s15, 4   ;;  %s985_s9 = smov %s643_s10 }
 0x14a   : > { %s986_s10 = smov %s647_s11  ;;  %s987_s11 = smov %s712_s18 }
 0x14b   : > { %s988_s12 = smov %s700_s15  ;;  %18 = sbr.rel (!%p16_p12) target bundleno = 6 (0x6), region = 77 }
 0x152   :  { %365 = vsyncpa [#allocation3], 1 }
 0x153   :  { %367 = vsyncpa [#allocation3 + $0x1], 1 }
 0x154   :  { %368 = vsyncpa [#allocation6], 1 }
 0x155   :  { %369 = vsyncpa [#allocation4], 1 }
 0x156   :  { %371 = vsyncpa [#allocation4 + $0x1], 1 }

</bundles_post_ra>
